<compile_context>
chip_gen: v6e
topology: v6e:2x2x1
jax: 0.10.0
libtpu: 0.0.40
codegen_flags: <defaults>
</compile_context>

<pallas_src>
import math
from functools import partial

import jax
import jax.numpy as jnp
from jax.experimental import pallas as pl
from jax.experimental.pallas import tpu as pltpu


def _gaussian_taps_1d(kernel_size: int, sigma: float):
    """1-D taps; same formula as GaussianSmoothing.__init__.

    Note: the module's exponent is -((i - mean) / (2*sigma))**2 (effective std
    sqrt(2)*sigma) -- reproduced verbatim on purpose.  Normalized so the
    separable outer product sums to 1, matching the module's 2-D normalization.
    """
    mean = (kernel_size - 1) / 2.0
    norm = 1.0 / (sigma * math.sqrt(2.0 * math.pi))
    g = [norm * math.exp(-(((i - mean) / (2.0 * sigma)) ** 2))
         for i in range(kernel_size)]
    s = sum(g)
    return tuple(t / s for t in g)


def _gauss_sep_kernel(x_ref, o_ref, tmp_ref, *, taps, K: int, Hout: int, Wout: int):
    """x_ref: VMEM (H, W, bt); o_ref: VMEM (Hout, Wout, bt); tmp_ref: VMEM f32 (Hout, W, bt).

    Lane dim (bt) is untouched by all shifts.  Vertical shifts are leading-dim
    address offsets; horizontal shifts are sublane-offset reads from scratch.
    """
    # --- vertical (H) pass: K taps, accumulate in f32, write to VMEM scratch ---
    acc_v = taps[0] * x_ref[0:Hout, :, :].astype(jnp.float32)
    for di in range(1, K):
        acc_v = acc_v + taps[di] * x_ref[di:di + Hout, :, :].astype(jnp.float32)
    tmp_ref[...] = acc_v

    # --- horizontal (W) pass: K taps over the scratch, cast to output dtype ---
    # TODO(synk): route the dj>0 shifts through pltpu.roll (idle XLU) instead of
    # sublane-offset loads once the rotate direction is validated on hardware.
    acc_h = taps[0] * tmp_ref[:, 0:Wout, :]
    for dj in range(1, K):
        acc_h = acc_h + taps[dj] * tmp_ref[:, dj:dj + Wout, :]
    o_ref[...] = acc_h.astype(o_ref.dtype)


def _vmem_limit_bytes() -> int:
    """Scoped-VMEM limit to request: ~3/4 of physical capacity (≈96 MiB on
    v5e/v6e, ≈48 MiB on v7x), falling back to 48 MiB if the query fails."""
    cap = None
    try:
        info = pltpu.get_tpu_info()
        cap = getattr(info, "vmem_capacity_bytes", None)
    except Exception:
        cap = None
    if not cap:
        cap = 64 * 1024 * 1024
    return int(cap * 3 // 4)


def _pick_lane_tile(B_pad: int, H: int, W: int, Hout: int, Wout: int,
                    itemsize: int, vmem_budget: int) -> int:
    """Largest lane tile (multiple of 128, dividing B_pad, <=2048) whose
    double-buffered in+out blocks plus the f32 scratch fit vmem_budget, while
    keeping at least 2 (ideally 4) grid steps for pipelining / megacore."""
    n128 = B_pad // 128

    def block_bytes(bt):
        in_b = H * W * bt * itemsize
        out_b = Hout * Wout * bt * itemsize
        scr_b = Hout * W * bt * 4  # f32 scratch, single-buffered
        return 2 * (in_b + out_b) + scr_b

    if n128 >= 4:
        min_steps = 4
    elif n128 >= 2:
        min_steps = 2
    else:
        min_steps = 1

    best = 128
    for t in range(1, n128 + 1):
        if n128 % t:
            continue
        bt = t * 128
        if bt > 2048:
            continue
        if n128 // t < min_steps:
            continue
        if block_bytes(bt) > vmem_budget:
            continue
        best = max(best, bt)
    # TODO(synk): if even bt=128 exceeds the budget (very large H*W on v7x's
    # 64 MiB VMEM), add an H grid axis with a (K-1)-row halo (element-offset
    # index map or manual pl.ANY + make_async_copy double-buffering).
    return best


def gaussian_smoothing_2d(x, *, channels: int, kernel_size: int = 3, sigma: float = 0.5):
    """Forward pass of GaussianSmoothing (dim=2) on an NCHW input."""
    N, C, H, W = x.shape
    assert C == channels
    K = kernel_size
    Hout, Wout = H - (K - 1), W - (K - 1)
    assert Hout > 0 and Wout > 0, "kernel_size too large for the input"
    B = N * C

    taps = _gaussian_taps_1d(K, sigma)

    # NOTE: the NCHW <-> (H, W, B) transposes exist only to preserve the
    # module's NCHW contract in a standalone script; if the surrounding graph
    # is channels-last, feed/consume the (H, W, B) layout directly and drop
    # them (each one is a full HBM read+write on a bandwidth-bound op).
    x_t = jnp.transpose(x.reshape(B, H, W), (1, 2, 0))          # (H, W, B)

    # Pad B to a multiple of 128 so every store is lane-dense (no vst.msk) and
    # the block never has to swallow an unaligned full-B extent.
    B_pad = ((B + 127) // 128) * 128
    if B_pad != B:
        x_t = jnp.pad(x_t, ((0, 0), (0, 0), (0, B_pad - B)))

    itemsize = jnp.dtype(x.dtype).itemsize
    vmem_limit = _vmem_limit_bytes()
    vmem_budget = int(vmem_limit * 0.8)                          # headroom
    bt = _pick_lane_tile(B_pad, H, W, Hout, Wout, itemsize, vmem_budget)
    grid = (B_pad // bt,)

    kernel = partial(_gauss_sep_kernel, taps=taps, K=K, Hout=Hout, Wout=Wout)

    out_t = pl.pallas_call(
        kernel,
        out_shape=jax.ShapeDtypeStruct((Hout, Wout, B_pad), x.dtype),
        grid=grid,
        in_specs=[pl.BlockSpec((H, W, bt), lambda b: (0, 0, b))],
        out_specs=pl.BlockSpec((Hout, Wout, bt), lambda b: (0, 0, b)),
        scratch_shapes=[pltpu.VMEM((Hout, W, bt), jnp.float32)],
        compiler_params=pltpu.CompilerParams(
            dimension_semantics=("parallel",),
            vmem_limit_bytes=vmem_limit,
        ),
    )(x_t)

    out_t = out_t[:, :, :B]                                      # drop pad lanes
    return jnp.transpose(out_t, (2, 0, 1)).reshape(N, C, Hout, Wout)


# ----------------------------- reference path ------------------------------

def _reference_weight(channels: int, kernel_size: int, sigma: float):
    """Mirror of the PyTorch buffer construction (f32 meshgrid formula)."""
    ks = [kernel_size, kernel_size]
    sig = [sigma, sigma]
    grids = jnp.meshgrid(*[jnp.arange(s, dtype=jnp.float32) for s in ks],
                         indexing="ij")
    kernel = jnp.ones((), dtype=jnp.float32)
    for size, std, mg in zip(ks, sig, grids):
        mean = (size - 1) / 2.0
        kernel = kernel * (
            1.0 / (std * math.sqrt(2.0 * math.pi))
            * jnp.exp(-(((mg - mean) / (2.0 * std)) ** 2))
        )
    kernel = kernel / jnp.sum(kernel)
    return jnp.broadcast_to(kernel, (channels,) + kernel.shape)  # (C, K, K)


def _reference(x, weight):
    """Pure-JAX reference: depthwise valid conv (groups=C), NCHW."""
    C = x.shape[1]
    K = weight.shape[-1]
    w = weight.reshape(C, 1, K, K).astype(x.dtype)
    return jax.lax.conv_general_dilated(
        x, w,
        window_strides=(1, 1),
        padding="VALID",
        dimension_numbers=("NCHW", "OIHW", "NCHW"),
        feature_group_count=C,
    )


if __name__ == "__main__":
    key = jax.random.PRNGKey(0)
    N, C, H, W = 2, 4, 16, 16
    x = jax.random.normal(key, (N, C, H, W), dtype=jnp.float32)

    out = gaussian_smoothing_2d(x, channels=C, kernel_size=3, sigma=0.5)
    out = jax.block_until_ready(out)

    ref = jax.block_until_ready(_reference(x, _reference_weight(C, 3, 0.5)))
    assert out.shape == (N, C, H - 2, W - 2)
    assert jnp.allclose(out, ref, atol=1e-5, rtol=1e-5)

    print("KERNEL_OK")
</pallas_src>

<mosaic_0001>
module attributes {stable_mosaic.version = 11 : i64} {
  func.func @_gauss_sep_kernel(%arg0: i32, %arg1: memref<16x16x128xf32, #tpu.memory_space<vmem>>, %arg2: memref<14x14x128xf32, #tpu.memory_space<vmem>>, %arg3: memref<14x16x128xf32, #tpu.memory_space<vmem>>) attributes {dimension_semantics = [#tpu.dimension_semantics<parallel>], iteration_bounds = array<i64: 1>, scalar_prefetch = 0 : i64, scratch_operands = 1 : i64, tpu.core_type = #tpu.core_type<tc>, window_params = [{transform_indices = @transform_0, window_bounds = array<i64: 16, 16, 128>}, {transform_indices = @transform_1, window_bounds = array<i64: 14, 14, 128>}]} {
    %c0 = arith.constant 0 : index
    %c0_0 = arith.constant 0 : index
    %c0_1 = arith.constant 0 : index
    %0 = vector.load %arg1[%c0, %c0_0, %c0_1] : memref<16x16x128xf32, #tpu.memory_space<vmem>>, vector<14x16x128xf32>
    %cst = arith.constant 0.211941555 : f32
    %1 = vector.broadcast %cst : f32 to vector<14x16x128xf32>
    %2 = arith.mulf %1, %0 : vector<14x16x128xf32>
    %c1 = arith.constant 1 : index
    %c0_2 = arith.constant 0 : index
    %c0_3 = arith.constant 0 : index
    %3 = vector.load %arg1[%c1, %c0_2, %c0_3] : memref<16x16x128xf32, #tpu.memory_space<vmem>>, vector<14x16x128xf32>
    %cst_4 = arith.constant 0.57611686 : f32
    %4 = vector.broadcast %cst_4 : f32 to vector<14x16x128xf32>
    %5 = arith.mulf %4, %3 : vector<14x16x128xf32>
    %6 = arith.addf %2, %5 : vector<14x16x128xf32>
    %c2 = arith.constant 2 : index
    %c0_5 = arith.constant 0 : index
    %c0_6 = arith.constant 0 : index
    %7 = vector.load %arg1[%c2, %c0_5, %c0_6] : memref<16x16x128xf32, #tpu.memory_space<vmem>>, vector<14x16x128xf32>
    %cst_7 = arith.constant 0.211941555 : f32
    %8 = vector.broadcast %cst_7 : f32 to vector<14x16x128xf32>
    %9 = arith.mulf %8, %7 : vector<14x16x128xf32>
    %10 = arith.addf %6, %9 : vector<14x16x128xf32>
    %c0_8 = arith.constant 0 : index
    %c0_9 = arith.constant 0 : index
    %c0_10 = arith.constant 0 : index
    %11 = vector.load %arg3[%c0_8, %c0_9, %c0_10] : memref<14x16x128xf32, #tpu.memory_space<vmem>>, vector<14x16x128xf32>
    tpu.vector_store %arg3[%c0_8, %c0_9, %c0_10], %10 {strides = array<i32>} : memref<14x16x128xf32, #tpu.memory_space<vmem>>, vector<14x16x128xf32>,
    %c0_11 = arith.constant 0 : index
    %c0_12 = arith.constant 0 : index
    %c0_13 = arith.constant 0 : index
    %12 = vector.load %arg3[%c0_11, %c0_12, %c0_13] : memref<14x16x128xf32, #tpu.memory_space<vmem>>, vector<14x14x128xf32>
    %cst_14 = arith.constant 0.211941555 : f32
    %13 = vector.broadcast %cst_14 : f32 to vector<14x14x128xf32>
    %14 = arith.mulf %13, %12 : vector<14x14x128xf32>
    %c0_15 = arith.constant 0 : index
    %c1_16 = arith.constant 1 : index
    %c0_17 = arith.constant 0 : index
    %15 = vector.load %arg3[%c0_15, %c1_16, %c0_17] : memref<14x16x128xf32, #tpu.memory_space<vmem>>, vector<14x14x128xf32>
    %cst_18 = arith.constant 0.57611686 : f32
    %16 = vector.broadcast %cst_18 : f32 to vector<14x14x128xf32>
    %17 = arith.mulf %16, %15 : vector<14x14x128xf32>
    %18 = arith.addf %14, %17 : vector<14x14x128xf32>
    %c0_19 = arith.constant 0 : index
    %c2_20 = arith.constant 2 : index
    %c0_21 = arith.constant 0 : index
    %19 = vector.load %arg3[%c0_19, %c2_20, %c0_21] : memref<14x16x128xf32, #tpu.memory_space<vmem>>, vector<14x14x128xf32>
    %cst_22 = arith.constant 0.211941555 : f32
    %20 = vector.broadcast %cst_22 : f32 to vector<14x14x128xf32>
    %21 = arith.mulf %20, %19 : vector<14x14x128xf32>
    %22 = arith.addf %18, %21 : vector<14x14x128xf32>
    %c0_23 = arith.constant 0 : index
    %c0_24 = arith.constant 0 : index
    %c0_25 = arith.constant 0 : index
    %23 = vector.load %arg2[%c0_23, %c0_24, %c0_25] : memref<14x14x128xf32, #tpu.memory_space<vmem>>, vector<14x14x128xf32>
    tpu.vector_store %arg2[%c0_23, %c0_24, %c0_25], %22 {strides = array<i32>} : memref<14x14x128xf32, #tpu.memory_space<vmem>>, vector<14x14x128xf32>,
    return
  }
  func.func @transform_0(%arg0: i32) -> (i32, i32, i32) {
    %c0_i32 = arith.constant 0 : i32
    %c0_i32_0 = arith.constant 0 : i32
    %c0_i32_1 = arith.constant 0 : i32
    return %c0_i32, %c0_i32_0, %arg0 : i32, i32, i32
  }
  func.func @transform_1(%arg0: i32) -> (i32, i32, i32) {
    %c0_i32 = arith.constant 0 : i32
    %c0_i32_0 = arith.constant 0 : i32
    %c0_i32_1 = arith.constant 0 : i32
    return %c0_i32, %c0_i32_0, %arg0 : i32, i32, i32
  }
}

</mosaic_0001>

<bundles_post_ra>
// kernel: tpu_custom_call.1
= control target key start
LH: loop header
LB: loop body
LE: loop exit
PB: predicated region body
PF: predicated region fallthrough
CT: control target
= control target key end

     0   :  { %6 = vsyncpa [#allocation4], 0  ;;  %s676_s0 = inlined_call_operand.hbm [shape: f32[16,16,128], index: 0, kind: input, shape index: {}]   ;;  %s677_s1 = inlined_call_operand.hbm [shape: f32[14,14,128], index: 1, kind: output, shape index: {}]  }
   0x1   :  { %7 = vsyncpa [#allocation5], 0  ;;  %s594_s6 = smov [#allocation3]  }
   0x2   :  { %s13_s7 = sshll.u32 %s594_s6, 4  ;;  %s14_s7 = int_to_ptr.vmem [resolvable:$true] %s13_s7 }
   0x3   :  { %s558_s8 = scalar_lea.vmem %s14_s7, 4096  ;;  %p563_p1 = scmp.lt.s32.totalorder %s14_s7, %s14_s7 }
   0x4   :  { %p559_p0 = scmp.ne.s32.totalorder %s14_s7, %s558_s8  ;;  %p564_p2 = scmp.lt.s32.totalorder %s558_s8, %s558_s8 }
   0x6   :  { %p565_p3 = por %p564_p2, %p563_p1 }
   0x8   :  { %p566_p4 = pnand %p565_p3, %p559_p0 }
   0xa   :  { %569 = shalt.err (!%p566_p4)
}
   0xb   :  { %s595_s9 = smov 128   ;;  %s596_s10 = smov 8  }
   0xc   :  { %19 = dma.hbm_to_vmem [thread:$0]  %s676_s0, 4096, %s14_s7, [#allocation4], %s595_s9, %s595_s9, %s596_s10  }
   0xd   :  { %590 = dma.done.wait [#allocation4], 4096  }
   0xe   :  { %591 = vsyncadd [#allocation4], 4294963200  ;;  %v23_v0 = vld [vmem:[#allocation3] sm:$0xff]  ;;  %v80_v1 = vld [vmem:[#allocation3 + $0x10] sm:$0xff]  ;;  %s597_s0 = smov [#allocation6]  }
   0xf   :  { %v165_v2 = vld [vmem:[#allocation3 + $0x20] sm:$0xff]  ;;  %v51_v3 = vmul.f32 0.21194156, %v23_v0  ;;  %v108_v4 = vmul.f32 0.57611686, %v80_v1  ;;  %v24_v6 = vld [vmem:[#allocation3 + $0x8] sm:$0xff] }
  0x10   :  { %v193_v5 = vmul.f32 0.21194156, %v165_v2  ;;  %v81_v7 = vld [vmem:[#allocation3 + $0x18] sm:$0xff]  ;;  %v166_v8 = vld [vmem:[#allocation3 + $0x28] sm:$0xff]  ;;  %v53_v9 = vmul.f32 0.21194156, %v80_v1 }
  0x11   :  { %v136_v10 = vadd.f32 %v108_v4, %v51_v3  ;;  %v52_v11 = vmul.f32 0.21194156, %v24_v6  ;;  %v109_v12 = vmul.f32 0.57611686, %v81_v7  ;;  %v194_v13 = vmul.f32 0.21194156, %v166_v8 }
  0x12   :  { %v110_v14 = vmul.f32 0.57611686, %v165_v2  ;;  %v167_v15 = vld [vmem:[#allocation3 + $0x30] sm:$0xff]  ;;  %v54_v16 = vmul.f32 0.21194156, %v81_v7  ;;  %v168_v17 = vld [vmem:[#allocation3 + $0x38] sm:$0xff] }
  0x13   :  { %v614_v18 = vadd.f32 %v193_v5, %v136_v10  ;;  %v137_v19 = vadd.f32 %v109_v12, %v52_v11  ;;  %v195_v20 = vmul.f32 0.21194156, %v167_v15  ;;  %v111_v21 = vmul.f32 0.57611686, %v166_v8  ;;  %v169_v22 = vld [vmem:[#allocation3 + $0x40] sm:$0xff]  ;;  %v170_v23 = vld [vmem:[#allocation3 + $0x48] sm:$0xff] }
  0x14   :  { %v138_v24 = vadd.f32 %v110_v14, %v53_v9  ;;  %v196_v25 = vmul.f32 0.21194156, %v168_v17  ;;  %v112_v26 = vmul.f32 0.57611686, %v167_v15  ;;  %v197_v27 = vmul.f32 0.21194156, %v169_v22 }
  0x15   :  { %249 = vst [vmem:[#allocation2] sm:$0xff] %v614_v18  ;;  %v222_v28 = vadd.f32 %v194_v13, %v137_v19  ;;  %v139_v29 = vadd.f32 %v111_v21, %v54_v16  ;;  %v113_v30 = vmul.f32 0.57611686, %v168_v17  ;;  %v198_v31 = vmul.f32 0.21194156, %v170_v23  ;;  %v171_v32 = vld [vmem:[#allocation3 + $0x50] sm:$0xff] }
  0x16   :  { %v172_v33 = vld [vmem:[#allocation3 + $0x58] sm:$0xff]  ;;  %v617_v34 = vadd.f32 %v195_v20, %v138_v24  ;;  %v140_v35 = vadd.f32 %v193_v5, %v112_v26  ;;  %v114_v36 = vmul.f32 0.57611686, %v169_v22  ;;  %v199_v37 = vmul.f32 0.21194156, %v171_v32  ;;  %v173_v38 = vld [vmem:[#allocation3 + $0x60] sm:$0xff] }
  0x17   :  { %v174_v39 = vld [vmem:[#allocation3 + $0x68] sm:$0xff]  ;;  %250 = vst [vmem:[#allocation2 + $0x8] sm:$0xff] %v222_v28  ;;  %v224_v40 = vadd.f32 %v196_v25, %v139_v29  ;;  %v141_v41 = vadd.f32 %v194_v13, %v113_v30  ;;  %v115_v42 = vmul.f32 0.57611686, %v170_v23  ;;  %v200_v43 = vmul.f32 0.21194156, %v172_v33 }
  0x18   :  { %v175_v44 = vld [vmem:[#allocation3 + $0x70] sm:$0xff]  ;;  %251 = vst [vmem:[#allocation2 + $0x10] sm:$0xff] %v617_v34  ;;  %v620_v45 = vadd.f32 %v197_v27, %v140_v35  ;;  %v142_v46 = vadd.f32 %v195_v20, %v114_v36  ;;  %v116_v47 = vmul.f32 0.57611686, %v171_v32  ;;  %v201_v48 = vmul.f32 0.21194156, %v173_v38 }
  0x19   :  { %v176_v49 = vld [vmem:[#allocation3 + $0x78] sm:$0xff]  ;;  %252 = vst [vmem:[#allocation2 + $0x18] sm:$0xff] %v224_v40  ;;  %v226_v50 = vadd.f32 %v198_v31, %v141_v41  ;;  %v143_v51 = vadd.f32 %v196_v25, %v115_v42  ;;  %v117_v52 = vmul.f32 0.57611686, %v172_v33  ;;  %v202_v53 = vmul.f32 0.21194156, %v174_v39 }
  0x1a   :  { %v177_v54 = vld [vmem:[#allocation3 + $0x80] sm:$0xff]  ;;  %253 = vst [vmem:[#allocation2 + $0x20] sm:$0xff] %v620_v45  ;;  %v623_v55 = vadd.f32 %v199_v37, %v142_v46  ;;  %v144_v56 = vadd.f32 %v197_v27, %v116_v47  ;;  %v118_v57 = vmul.f32 0.57611686, %v173_v38  ;;  %v203_v58 = vmul.f32 0.21194156, %v175_v44 }
  0x1b   :  { %v178_v59 = vld [vmem:[#allocation3 + $0x88] sm:$0xff]  ;;  %254 = vst [vmem:[#allocation2 + $0x28] sm:$0xff] %v226_v50  ;;  %v228_v60 = vadd.f32 %v200_v43, %v143_v51  ;;  %v145_v61 = vadd.f32 %v198_v31, %v117_v52  ;;  %v119_v62 = vmul.f32 0.57611686, %v174_v39  ;;  %v204_v63 = vmul.f32 0.21194156, %v176_v49 }
  0x1c   :  { %v179_v0 = vld [vmem:[#allocation3 + $0x90] sm:$0xff]  ;;  %255 = vst [vmem:[#allocation2 + $0x30] sm:$0xff] %v623_v55  ;;  %v626_v1 = vadd.f32 %v201_v48, %v144_v56  ;;  %v146_v2 = vadd.f32 %v199_v37, %v118_v57  ;;  %v120_v3 = vmul.f32 0.57611686, %v175_v44  ;;  %v205_v4 = vmul.f32 0.21194156, %v177_v54 }
  0x1d   :  { %v180_v5 = vld [vmem:[#allocation3 + $0x98] sm:$0xff]  ;;  %256 = vst [vmem:[#allocation2 + $0x38] sm:$0xff] %v228_v60  ;;  %v230_v6 = vadd.f32 %v202_v53, %v145_v61  ;;  %v147_v7 = vadd.f32 %v200_v43, %v119_v62  ;;  %v121_v8 = vmul.f32 0.57611686, %v176_v49  ;;  %v206_v9 = vmul.f32 0.21194156, %v178_v59 }
  0x1e   :  { %v181_v10 = vld [vmem:[#allocation3 + $0xa0] sm:$0xff]  ;;  %257 = vst [vmem:[#allocation2 + $0x40] sm:$0xff] %v626_v1  ;;  %v629_v11 = vadd.f32 %v203_v58, %v146_v2  ;;  %v148_v12 = vadd.f32 %v201_v48, %v120_v3  ;;  %v122_v13 = vmul.f32 0.57611686, %v177_v54  ;;  %v207_v14 = vmul.f32 0.21194156, %v179_v0 }
  0x1f   :  { %v182_v15 = vld [vmem:[#allocation3 + $0xa8] sm:$0xff]  ;;  %258 = vst [vmem:[#allocation2 + $0x48] sm:$0xff] %v230_v6  ;;  %v232_v16 = vadd.f32 %v204_v63, %v147_v7  ;;  %v149_v17 = vadd.f32 %v202_v53, %v121_v8  ;;  %v123_v19 = vmul.f32 0.57611686, %v178_v59  ;;  %v208_v20 = vmul.f32 0.21194156, %v180_v5 }
  0x20   :  { %v183_v21 = vld [vmem:[#allocation3 + $0xb0] sm:$0xff]  ;;  %259 = vst [vmem:[#allocation2 + $0x50] sm:$0xff] %v629_v11  ;;  %v632_v22 = vadd.f32 %v205_v4, %v148_v12  ;;  %v150_v23 = vadd.f32 %v203_v58, %v122_v13  ;;  %v124_v24 = vmul.f32 0.57611686, %v179_v0  ;;  %v209_v25 = vmul.f32 0.21194156, %v181_v10 }
  0x21   :  { %v184_v26 = vld [vmem:[#allocation3 + $0xb8] sm:$0xff]  ;;  %260 = vst [vmem:[#allocation2 + $0x58] sm:$0xff] %v232_v16  ;;  %v234_v27 = vadd.f32 %v206_v9, %v149_v17  ;;  %v151_v28 = vadd.f32 %v204_v63, %v123_v19  ;;  %v125_v29 = vmul.f32 0.57611686, %v180_v5  ;;  %v210_v30 = vmul.f32 0.21194156, %v182_v15 }
  0x22   :  { %v185_v31 = vld [vmem:[#allocation3 + $0xc0] sm:$0xff]  ;;  %261 = vst [vmem:[#allocation2 + $0x60] sm:$0xff] %v632_v22  ;;  %v635_v32 = vadd.f32 %v207_v14, %v150_v23  ;;  %v152_v33 = vadd.f32 %v205_v4, %v124_v24  ;;  %v126_v35 = vmul.f32 0.57611686, %v181_v10  ;;  %v211_v36 = vmul.f32 0.21194156, %v183_v21 }
  0x23   :  { %v186_v37 = vld [vmem:[#allocation3 + $0xc8] sm:$0xff]  ;;  %262 = vst [vmem:[#allocation2 + $0x68] sm:$0xff] %v234_v27  ;;  %v236_v38 = vadd.f32 %v208_v20, %v151_v28  ;;  %v153_v39 = vadd.f32 %v206_v9, %v125_v29  ;;  %v127_v40 = vmul.f32 0.57611686, %v182_v15  ;;  %v212_v41 = vmul.f32 0.21194156, %v184_v26 }
  0x24   :  { %v187_v42 = vld [vmem:[#allocation3 + $0xd0] sm:$0xff]  ;;  %263 = vst [vmem:[#allocation2 + $0x70] sm:$0xff] %v635_v32  ;;  %v638_v43 = vadd.f32 %v209_v25, %v152_v33  ;;  %v154_v44 = vadd.f32 %v207_v14, %v126_v35  ;;  %v128_v46 = vmul.f32 0.57611686, %v183_v21  ;;  %v213_v47 = vmul.f32 0.21194156, %v185_v31 }
  0x25   :  { %v188_v48 = vld [vmem:[#allocation3 + $0xd8] sm:$0xff]  ;;  %264 = vst [vmem:[#allocation2 + $0x78] sm:$0xff] %v236_v38  ;;  %v238_v49 = vadd.f32 %v210_v30, %v153_v39  ;;  %v155_v50 = vadd.f32 %v208_v20, %v127_v40  ;;  %v129_v51 = vmul.f32 0.57611686, %v184_v26  ;;  %v214_v52 = vmul.f32 0.21194156, %v186_v37 }
  0x26   :  { %v189_v53 = vld [vmem:[#allocation3 + $0xe0] sm:$0xff]  ;;  %265 = vst [vmem:[#allocation2 + $0x80] sm:$0xff] %v638_v43  ;;  %v641_v54 = vadd.f32 %v211_v36, %v154_v44  ;;  %v156_v56 = vadd.f32 %v209_v25, %v128_v46  ;;  %v130_v57 = vmul.f32 0.57611686, %v185_v31  ;;  %v215_v58 = vmul.f32 0.21194156, %v187_v42 }
  0x27   :  { %v190_v59 = vld [vmem:[#allocation3 + $0xe8] sm:$0xff]  ;;  %v191_v60 = vld [vmem:[#allocation3 + $0xf0] sm:$0xff]  ;;  %266 = vst [vmem:[#allocation2 + $0x88] sm:$0xff] %v238_v49  ;;  %v240_v61 = vadd.f32 %v212_v41, %v155_v50  ;;  %v157_v62 = vadd.f32 %v210_v30, %v129_v51  ;;  %v131_v63 = vmul.f32 0.57611686, %v186_v37  ;;  %v192_v2 = vld [vmem:[#allocation3 + $0xf8] sm:$0xff] }
  0x28   :  { %v216_v0 = vmul.f32 0.21194156, %v188_v48  ;;  %v333_v3 = vld [vmem:[#allocation2 + $0x1] sm:$0xff]  ;;  %267 = vst [vmem:[#allocation2 + $0x90] sm:$0xff] %v641_v54  ;;  %v644_v4 = vadd.f32 %v213_v47, %v156_v56  ;;  %v158_v5 = vadd.f32 %v211_v36, %v130_v57  ;;  %v132_v6 = vmul.f32 0.57611686, %v187_v42 }
  0x29   :  { %v217_v7 = vmul.f32 0.21194156, %v189_v53  ;;  %v278_v8 = vld [vmem:[#allocation2 + $0x8] sm:$0x3f]  ;;  %268 = vst [vmem:[#allocation2 + $0x98] sm:$0xff] %v240_v61  ;;  %v242_v9 = vadd.f32 %v214_v52, %v157_v62  ;;  %v159_v10 = vadd.f32 %v212_v41, %v131_v63  ;;  %v335_v23 = vld [vmem:[#allocation2 + $0x11] sm:$0xff] }
  0x2a   :  { %v133_v12 = vmul.f32 0.57611686, %v188_v48  ;;  %v218_v13 = vmul.f32 0.21194156, %v190_v59  ;;  %v334_v14 = vld [vmem:[#allocation2 + $0x9] sm:$0x3f]  ;;  %v647_v16 = vadd.f32 %v215_v58, %v158_v5  ;;  %v160_v17 = vadd.f32 %v213_v47, %v132_v6 }
  0x2b   :  { %v418_v15 = vld [vmem:[#allocation2 + $0xa] sm:$0x3f]  ;;  %269 = vst [vmem:[#allocation2 + $0xa0] sm:$0xff] %v644_v4  ;;  %v134_v19 = vmul.f32 0.57611686, %v189_v53  ;;  %v417_v21 = vld [vmem:[#allocation2 + $0x2] sm:$0xff]  ;;  %v244_v24 = vadd.f32 %v216_v0, %v159_v10 }
  0x2c   :  { %v219_v20 = vmul.f32 0.21194156, %v191_v60  ;;  %270 = vst [vmem:[#allocation2 + $0xa8] sm:$0xff] %v242_v9  ;;  %v161_v25 = vadd.f32 %v214_v52, %v133_v12  ;;  %v135_v26 = vmul.f32 0.57611686, %v190_v59  ;;  %271 = vst [vmem:[#allocation2 + $0xb0] sm:$0xff] %v647_v16  ;;  %v650_v30 = vadd.f32 %v217_v7, %v160_v17 }
  0x2d   :  { %v220_v27 = vmul.f32 0.21194156, %v192_v2  ;;  %v280_v28 = vld [vmem:[#allocation2 + $0x18] sm:$0x3f]  ;;  %v162_v31 = vadd.f32 %v215_v58, %v134_v19  ;;  %v305_v33 = vmul.f32 0.21194156, %v614_v18 }
  0x2e   :  { %v336_v29 = vld [vmem:[#allocation2 + $0x19] sm:$0x3f]  ;;  %v361_v35 = vmul.f32 0.57611686, %v333_v3  ;;  %v337_v38 = vld [vmem:[#allocation2 + $0x21] sm:$0xff]  ;;  %272 = vst [vmem:[#allocation2 + $0xb8] sm:$0xff] %v244_v24  ;;  %v246_v39 = vadd.f32 %v218_v13, %v161_v25  ;;  %v163_v40 = vadd.f32 %v216_v0, %v135_v26 }
  0x2f   :  { %v419_v36 = vld [vmem:[#allocation2 + $0x12] sm:$0xff]  ;;  %v420_v37 = vld [vmem:[#allocation2 + $0x1a] sm:$0x3f]  ;;  %v445_v41 = vmul.f32 0.21194156, %v417_v21  ;;  %v421_v44 = vld [vmem:[#allocation2 + $0x22] sm:$0xff]  ;;  %v654_v47 = vadd.f32 %v219_v20, %v162_v31 }
  0x30   :  { %v306_v42 = vmul.f32 0.21194156, %v278_v8  ;;  %v282_v46 = vld [vmem:[#allocation2 + $0x28] sm:$0x3f]  ;;  %273 = vst [vmem:[#allocation2 + $0xc0] sm:$0xff] %v650_v30  ;;  %v389_v48 = vadd.f32 %v361_v35, %v305_v33  ;;  %274 = vst [vmem:[#allocation2 + $0xc8] sm:$0xff] %v246_v39  ;;  %v248_v52 = vadd.f32 %v220_v27, %v163_v40 }
  0x31   :  { %v362_v49 = vmul.f32 0.57611686, %v334_v14  ;;  %v446_v50 = vmul.f32 0.21194156, %v418_v15  ;;  %v338_v51 = vld [vmem:[#allocation2 + $0x29] sm:$0x3f] }
  0x32   :  { %v422_v18 = vld [vmem:[#allocation2 + $0x2a] sm:$0x3f]  ;;  %v307_v53 = vmul.f32 0.21194156, %v617_v34  ;;  %v363_v56 = vmul.f32 0.57611686, %v335_v23  ;;  %v473_v59 = vadd.f32 %v445_v41, %v389_v48 }
  0x33   :  { %v447_v57 = vmul.f32 0.21194156, %v419_v36  ;;  %v339_v58 = vld [vmem:[#allocation2 + $0x31] sm:$0xff]  ;;  %275 = vst [vmem:[#allocation2 + $0xd0] sm:$0xff] %v654_v47  ;;  %v390_v60 = vadd.f32 %v362_v49, %v306_v42  ;;  %v308_v61 = vmul.f32 0.21194156, %v280_v28 }
  0x34   :  { %v364_v62 = vmul.f32 0.57611686, %v336_v29  ;;  %v284_v63 = vld [vmem:[#allocation2 + $0x38] sm:$0x3f]  ;;  %276 = vst [vmem:[#allocation2 + $0xd8] sm:$0xff] %v248_v52  ;;  %v391_v2 = vadd.f32 %v363_v56, %v307_v53  ;;  %501 = vst [vmem:[#allocation6] sm:$0xff] %v473_v59 }
  0x35   :  { %v340_v0 = vld [vmem:[#allocation2 + $0x39] sm:$0x3f]  ;;  %v448_v3 = vmul.f32 0.21194156, %v420_v37  ;;  %v309_v5 = vmul.f32 0.21194156, %v620_v45  ;;  %v474_v34 = vadd.f32 %v446_v50, %v390_v60 }
  0x36   :  { %v365_v6 = vmul.f32 0.57611686, %v337_v38  ;;  %v423_v7 = vld [vmem:[#allocation2 + $0x32] sm:$0xff]  ;;  %v392_v8 = vadd.f32 %v364_v62, %v308_v61  ;;  %v449_v9 = vmul.f32 0.21194156, %v421_v44  ;;  %v475_v13 = vadd.f32 %v447_v57, %v391_v2  ;;  %v341_v19 = vld [vmem:[#allocation2 + $0x41] sm:$0xff] }
  0x37   :  { %v310_v10 = vmul.f32 0.21194156, %v282_v46  ;;  %v424_v12 = vld [vmem:[#allocation2 + $0x3a] sm:$0x3f]  ;;  %v366_v15 = vmul.f32 0.57611686, %v338_v51 }
  0x38   :  { %v393_v14 = vadd.f32 %v365_v6, %v309_v5  ;;  %v450_v17 = vmul.f32 0.21194156, %v422_v18  ;;  %v425_v20 = vld [vmem:[#allocation2 + $0x42] sm:$0xff]  ;;  %502 = vst [vmem:[#allocation6 + $0x8] sm:$0x3f] %v474_v34  ;;  %v476_v21 = vadd.f32 %v448_v3, %v392_v8  ;;  %503 = vst [vmem:[#allocation6 + $0x10] sm:$0xff] %v475_v13 }
  0x39   :  { %v311_v23 = vmul.f32 0.21194156, %v623_v55  ;;  %v367_v24 = vmul.f32 0.57611686, %v339_v58  ;;  %v286_v45 = vld [vmem:[#allocation2 + $0x48] sm:$0x3f]  ;;  %v394_v26 = vadd.f32 %v366_v15, %v310_v10 }
  0x3a   :  { %v477_v25 = vadd.f32 %v449_v9, %v393_v14  ;;  %v312_v27 = vmul.f32 0.21194156, %v284_v63  ;;  %v368_v28 = vmul.f32 0.57611686, %v340_v0  ;;  %v342_v29 = vld [vmem:[#allocation2 + $0x49] sm:$0x3f] }
  0x3b   :  { %504 = vst [vmem:[#allocation6 + $0x18] sm:$0x3f] %v476_v21  ;;  %v395_v31 = vadd.f32 %v367_v24, %v311_v23  ;;  %v451_v33 = vmul.f32 0.21194156, %v423_v7  ;;  %v313_v35 = vmul.f32 0.21194156, %v626_v1  ;;  %v478_v37 = vadd.f32 %v450_v17, %v394_v26 }
  0x3c   :  { %v369_v36 = vmul.f32 0.57611686, %v341_v19  ;;  %505 = vst [vmem:[#allocation6 + $0x20] sm:$0xff] %v477_v25  ;;  %v396_v38 = vadd.f32 %v368_v28, %v312_v27  ;;  %v452_v39 = vmul.f32 0.21194156, %v424_v12  ;;  %v343_v48 = vld [vmem:[#allocation2 + $0x51] sm:$0xff] }
  0x3d   :  { %v314_v40 = vmul.f32 0.21194156, %v286_v45  ;;  %v426_v55 = vld [vmem:[#allocation2 + $0x4a] sm:$0x3f]  ;;  %v479_v41 = vadd.f32 %v451_v33, %v395_v31  ;;  %v453_v44 = vmul.f32 0.21194156, %v425_v20 }
  0x3e   :  { %v397_v42 = vadd.f32 %v369_v36, %v313_v35  ;;  %v370_v46 = vmul.f32 0.57611686, %v342_v29  ;;  %v427_v49 = vld [vmem:[#allocation2 + $0x52] sm:$0xff]  ;;  %506 = vst [vmem:[#allocation6 + $0x28] sm:$0x3f] %v478_v37  ;;  %v480_v50 = vadd.f32 %v452_v39, %v396_v38  ;;  %v345_v2 = vld [vmem:[#allocation2 + $0x61] sm:$0xff] }
  0x3f   :  { %v454_v51 = vmul.f32 0.21194156, %v426_v55  ;;  %v315_v18 = vmul.f32 0.21194156, %v629_v11  ;;  %v371_v52 = vmul.f32 0.57611686, %v343_v48 }
  0x40   :  { %507 = vst [vmem:[#allocation6 + $0x30] sm:$0xff] %v479_v41  ;;  %v481_v1 = vadd.f32 %v453_v44, %v397_v42  ;;  %v398_v53 = vadd.f32 %v370_v46, %v314_v40  ;;  %v288_v56 = vld [vmem:[#allocation2 + $0x58] sm:$0x3f]  ;;  %508 = vst [vmem:[#allocation6 + $0x38] sm:$0x3f] %v480_v50  ;;  %v429_v3 = vld [vmem:[#allocation2 + $0x62] sm:$0xff] }
  0x41   :  { %v344_v57 = vld [vmem:[#allocation2 + $0x59] sm:$0x3f]  ;;  %v399_v59 = vadd.f32 %v371_v52, %v315_v18  ;;  %v455_v60 = vmul.f32 0.21194156, %v427_v49  ;;  %v316_v61 = vmul.f32 0.21194156, %v288_v56 }
  0x42   :  { %v428_v58 = vld [vmem:[#allocation2 + $0x5a] sm:$0x3f]  ;;  %v372_v62 = vmul.f32 0.57611686, %v344_v57  ;;  %509 = vst [vmem:[#allocation6 + $0x40] sm:$0xff] %v481_v1  ;;  %v482_v63 = vadd.f32 %v454_v51, %v398_v53  ;;  %v347_v19 = vld [vmem:[#allocation2 + $0x71] sm:$0xff] }
  0x43   :  { %v317_v0 = vmul.f32 0.21194156, %v632_v22  ;;  %v290_v5 = vld [vmem:[#allocation2 + $0x68] sm:$0x3f]  ;;  %v483_v11 = vadd.f32 %v455_v60, %v399_v59  ;;  %v456_v7 = vmul.f32 0.21194156, %v428_v58 }
  0x44   :  { %v400_v6 = vadd.f32 %v372_v62, %v316_v61  ;;  %v373_v34 = vmul.f32 0.57611686, %v345_v2  ;;  %v346_v8 = vld [vmem:[#allocation2 + $0x69] sm:$0x3f]  ;;  %510 = vst [vmem:[#allocation6 + $0x48] sm:$0x3f] %v482_v63 }
  0x45   :  { %v318_v9 = vmul.f32 0.21194156, %v290_v5  ;;  %v374_v10 = vmul.f32 0.57611686, %v346_v8  ;;  %v430_v12 = vld [vmem:[#allocation2 + $0x6a] sm:$0x3f] }
  0x46   :  { %511 = vst [vmem:[#allocation6 + $0x50] sm:$0xff] %v483_v11  ;;  %v484_v13 = vadd.f32 %v456_v7, %v400_v6  ;;  %v401_v14 = vadd.f32 %v373_v34, %v317_v0  ;;  %v457_v15 = vmul.f32 0.21194156, %v429_v3  ;;  %v319_v17 = vmul.f32 0.21194156, %v635_v32  ;;  %v431_v22 = vld [vmem:[#allocation2 + $0x72] sm:$0xff] }
  0x47   :  { %v402_v20 = vadd.f32 %v374_v10, %v318_v9  ;;  %v458_v21 = vmul.f32 0.21194156, %v430_v12  ;;  %v375_v23 = vmul.f32 0.57611686, %v347_v19  ;;  %v292_v24 = vld [vmem:[#allocation2 + $0x78] sm:$0x3f] }
  0x48   :  { %512 = vst [vmem:[#allocation6 + $0x58] sm:$0x3f] %v484_v13  ;;  %v485_v45 = vadd.f32 %v457_v15, %v401_v14  ;;  %v320_v25 = vmul.f32 0.21194156, %v292_v24  ;;  %v348_v26 = vld [vmem:[#allocation2 + $0x79] sm:$0x3f] }
  0x49   :  { %v432_v27 = vld [vmem:[#allocation2 + $0x7a] sm:$0x3f]  ;;  %v486_v28 = vadd.f32 %v458_v21, %v402_v20  ;;  %v403_v29 = vadd.f32 %v375_v23, %v319_v17  ;;  %v459_v31 = vmul.f32 0.21194156, %v431_v22  ;;  %v376_v33 = vmul.f32 0.57611686, %v348_v26 }
  0x4a   :  { %v349_v35 = vld [vmem:[#allocation2 + $0x81] sm:$0xff]  ;;  %513 = vst [vmem:[#allocation6 + $0x60] sm:$0xff] %v485_v45  ;;  %v460_v37 = vmul.f32 0.21194156, %v432_v27  ;;  %v321_v32 = vmul.f32 0.21194156, %v638_v43 }
  0x4b   :  { %v433_v36 = vld [vmem:[#allocation2 + $0x82] sm:$0xff]  ;;  %v377_v38 = vmul.f32 0.57611686, %v349_v35  ;;  %514 = vst [vmem:[#allocation6 + $0x68] sm:$0x3f] %v486_v28  ;;  %v487_v39 = vadd.f32 %v459_v31, %v403_v29  ;;  %v404_v40 = vadd.f32 %v376_v33, %v320_v25  ;;  %v351_v18 = vld [vmem:[#allocation2 + $0x91] sm:$0xff] }
  0x4c   :  { %v294_v55 = vld [vmem:[#allocation2 + $0x88] sm:$0x3f]  ;;  %v461_v46 = vmul.f32 0.21194156, %v433_v36  ;;  %v323_v51 = vmul.f32 0.21194156, %v641_v54 }
  0x4d   :  { %v350_v41 = vld [vmem:[#allocation2 + $0x89] sm:$0x3f]  ;;  %v405_v44 = vadd.f32 %v377_v38, %v321_v32  ;;  %v322_v48 = vmul.f32 0.21194156, %v294_v55  ;;  %515 = vst [vmem:[#allocation6 + $0x70] sm:$0xff] %v487_v39  ;;  %v488_v50 = vadd.f32 %v460_v37, %v404_v40  ;;  %v435_v52 = vld [vmem:[#allocation2 + $0x92] sm:$0xff] }
  0x4e   :  { %v434_v42 = vld [vmem:[#allocation2 + $0x8a] sm:$0x3f]  ;;  %v378_v49 = vmul.f32 0.57611686, %v350_v41  ;;  %v296_v1 = vld [vmem:[#allocation2 + $0x98] sm:$0x3f] }
  0x4f   :  { %v489_v53 = vadd.f32 %v461_v46, %v405_v44  ;;  %v462_v56 = vmul.f32 0.21194156, %v434_v42  ;;  %v379_v57 = vmul.f32 0.57611686, %v351_v18  ;;  %v352_v58 = vld [vmem:[#allocation2 + $0x99] sm:$0x3f] }
  0x50   :  { %v406_v43 = vadd.f32 %v378_v49, %v322_v48  ;;  %516 = vst [vmem:[#allocation6 + $0x78] sm:$0x3f] %v488_v50  ;;  %v324_v59 = vmul.f32 0.21194156, %v296_v1  ;;  %v380_v60 = vmul.f32 0.57611686, %v352_v58 }
  0x51   :  { %v436_v61 = vld [vmem:[#allocation2 + $0x9a] sm:$0x3f]  ;;  %517 = vst [vmem:[#allocation6 + $0x80] sm:$0xff] %v489_v53  ;;  %v407_v63 = vadd.f32 %v379_v57, %v323_v51  ;;  %v463_v0 = vmul.f32 0.21194156, %v435_v52  ;;  %v353_v3 = vld [vmem:[#allocation2 + $0xa1] sm:$0xff] }
  0x52   :  { %v490_v62 = vadd.f32 %v462_v56, %v406_v43  ;;  %v325_v2 = vmul.f32 0.21194156, %v644_v4  ;;  %v437_v54 = vld [vmem:[#allocation2 + $0xa2] sm:$0xff]  ;;  %v408_v5 = vadd.f32 %v380_v60, %v324_v59  ;;  %v464_v11 = vmul.f32 0.21194156, %v436_v61  ;;  %v355_v17 = vld [vmem:[#allocation2 + $0xb1] sm:$0xff] }
  0x53   :  { %v381_v6 = vmul.f32 0.57611686, %v353_v3  ;;  %v298_v7 = vld [vmem:[#allocation2 + $0xa8] sm:$0x3f]  ;;  %v491_v34 = vadd.f32 %v463_v0, %v407_v63  ;;  %v465_v14 = vmul.f32 0.21194156, %v437_v54 }
  0x54   :  { %518 = vst [vmem:[#allocation6 + $0x88] sm:$0x3f] %v490_v62  ;;  %v326_v8 = vmul.f32 0.21194156, %v298_v7  ;;  %v354_v9 = vld [vmem:[#allocation2 + $0xa9] sm:$0x3f]  ;;  %v492_v12 = vadd.f32 %v464_v11, %v408_v5 }
  0x55   :  { %v438_v10 = vld [vmem:[#allocation2 + $0xaa] sm:$0x3f]  ;;  %v409_v13 = vadd.f32 %v381_v6, %v325_v2  ;;  %v382_v15 = vmul.f32 0.57611686, %v354_v9  ;;  %v439_v19 = vld [vmem:[#allocation2 + $0xb2] sm:$0xff]  ;;  %519 = vst [vmem:[#allocation6 + $0x90] sm:$0xff] %v491_v34 }
  0x56   :  { %v466_v22 = vmul.f32 0.21194156, %v438_v10  ;;  %v327_v4 = vmul.f32 0.21194156, %v647_v16  ;;  %v383_v20 = vmul.f32 0.57611686, %v355_v17 }
  0x57   :  { %520 = vst [vmem:[#allocation6 + $0x98] sm:$0x3f] %v492_v12  ;;  %v493_v21 = vadd.f32 %v465_v14, %v409_v13  ;;  %v410_v23 = vadd.f32 %v382_v15, %v326_v8  ;;  %v300_v24 = vld [vmem:[#allocation2 + $0xb8] sm:$0x3f]  ;;  %v467_v27 = vmul.f32 0.21194156, %v439_v19 }
  0x58   :  { %v356_v45 = vld [vmem:[#allocation2 + $0xb9] sm:$0x3f]  ;;  %v411_v26 = vadd.f32 %v383_v20, %v327_v4  ;;  %v328_v28 = vmul.f32 0.21194156, %v300_v24  ;;  %v329_v33 = vmul.f32 0.21194156, %v650_v30 }
  0x59   :  { %v440_v25 = vld [vmem:[#allocation2 + $0xba] sm:$0x3f]  ;;  %v384_v29 = vmul.f32 0.57611686, %v356_v45  ;;  %521 = vst [vmem:[#allocation6 + $0xa0] sm:$0xff] %v493_v21  ;;  %v494_v31 = vadd.f32 %v466_v22, %v410_v23  ;;  %v357_v35 = vld [vmem:[#allocation2 + $0xc1] sm:$0xff] }
  0x5a   :  { %v441_v36 = vld [vmem:[#allocation2 + $0xc2] sm:$0xff]  ;;  %v495_v32 = vadd.f32 %v467_v27, %v411_v26  ;;  %v468_v38 = vmul.f32 0.21194156, %v440_v25  ;;  %v385_v39 = vmul.f32 0.57611686, %v357_v35  ;;  %v359_v50 = vld [vmem:[#allocation2 + $0xd1] sm:$0xff] }
  0x5b   :  { %v302_v37 = vld [vmem:[#allocation2 + $0xc8] sm:$0x3f]  ;;  %v412_v16 = vadd.f32 %v384_v29, %v328_v28  ;;  %522 = vst [vmem:[#allocation6 + $0xa8] sm:$0x3f] %v494_v31  ;;  %v469_v48 = vmul.f32 0.21194156, %v441_v36 }
  0x5c   :  { %v358_v40 = vld [vmem:[#allocation2 + $0xc9] sm:$0x3f]  ;;  %v330_v55 = vmul.f32 0.21194156, %v302_v37  ;;  %523 = vst [vmem:[#allocation6 + $0xb0] sm:$0xff] %v495_v32  ;;  %v413_v46 = vadd.f32 %v385_v39, %v329_v33  ;;  %v443_v30 = vld [vmem:[#allocation2 + $0xd2] sm:$0xff] }
  0x5d   :  { %v386_v41 = vmul.f32 0.57611686, %v358_v40  ;;  %v442_v42 = vld [vmem:[#allocation2 + $0xca] sm:$0x3f]  ;;  %v496_v44 = vadd.f32 %v468_v38, %v412_v16  ;;  %v331_v49 = vmul.f32 0.21194156, %v654_v47 }
  0x5e   :  { %v470_v18 = vmul.f32 0.21194156, %v442_v42  ;;  %v387_v52 = vmul.f32 0.57611686, %v359_v50  ;;  %v304_v1 = vld [vmem:[#allocation2 + $0xd8] sm:$0x3f]  ;;  %v497_v53 = vadd.f32 %v469_v48, %v413_v46 }
  0x5f   :  { %v414_v51 = vadd.f32 %v386_v41, %v330_v55  ;;  %524 = vst [vmem:[#allocation6 + $0xb8] sm:$0x3f] %v496_v44  ;;  %v332_v43 = vmul.f32 0.21194156, %v304_v1  ;;  %v360_v56 = vld [vmem:[#allocation2 + $0xd9] sm:$0x3f] }
  0x60   :  { %v444_v57 = vld [vmem:[#allocation2 + $0xda] sm:$0x3f]  ;;  %v415_v59 = vadd.f32 %v387_v52, %v331_v49  ;;  %v471_v60 = vmul.f32 0.21194156, %v443_v30  ;;  %v388_v61 = vmul.f32 0.57611686, %v360_v56 }
  0x61   :  { %v498_v58 = vadd.f32 %v470_v18, %v414_v51  ;;  %525 = vst [vmem:[#allocation6 + $0xc0] sm:$0xff] %v497_v53  ;;  %s534_s13 = sshll.u32 %s597_s0, 4  ;;  %v472_v63 = vmul.f32 0.21194156, %v444_v57  ;;  %s535_s13 = int_to_ptr.vmem [resolvable:$true] %s534_s13 }
  0x62   :  { %v499_v47 = vadd.f32 %v471_v60, %v415_v59  ;;  %v416_v62 = vadd.f32 %v388_v61, %v332_v43  ;;  %s570_s14 = scalar_lea.vmem %s535_s13, 3584  ;;  %p575_p6 = scmp.lt.s32.totalorder %s535_s13, %s535_s13 }
  0x63   :  { %526 = vst [vmem:[#allocation6 + $0xc8] sm:$0x3f] %v498_v58  ;;  %p571_p5 = scmp.ne.s32.totalorder %s535_s13, %s570_s14  ;;  %p576_p7 = scmp.lt.s32.totalorder %s570_s14, %s570_s14 }
  0x64   :  { %527 = vst [vmem:[#allocation6 + $0xd0] sm:$0xff] %v499_v47  ;;  %v500_v0 = vadd.f32 %v472_v63, %v416_v62 }
  0x65   :  { %p577_p8 = por %p576_p7, %p575_p6 }
  0x66   :  { %528 = vst [vmem:[#allocation6 + $0xd8] sm:$0x3f] %v500_v0 }
  0x67   :  { %p578_p9 = pnand %p577_p8, %p571_p5 }
  0x69   :  { %581 = shalt.err (!%p578_p9)
}
  0x6a   :  { %540 = dma.vmem_to_hbm [thread:$0]  %s535_s13, 3584, %s677_s1, [#allocation5], %s595_s9, %s595_s9, %s596_s10  }
  0x6b   :  { %592 = dma.done.wait [#allocation5], 3584  }
  0x6c   :  { %593 = vsyncadd [#allocation5], 4294963712 }
  0x6d   :  { %544 = vsyncpa [#allocation4], 1 }
  0x6e   :  { %545 = vsyncpa [#allocation5], 1 }

</bundles_post_ra>
